<compile_context>
chip_gen: v5e
topology: v5e:2x2
jax: 0.10.0
libtpu: 0.0.40
codegen_flags: <defaults>
</compile_context>

<pallas_src>
import functools

import jax
import jax.numpy as jnp
from jax.experimental import pallas as pl
from jax.experimental.pallas import tpu as pltpu


def projection_head_kernel(z_ref, w1_ref, b1_ref, w2_ref, b2_ref, o_ref):
    # Fused MLP tile: hidden = relu(z @ W1 + b1); out = hidden @ W2 + b2
    z = z_ref[...]
    # First matmul: bf16 (or f32) operands, f32 accumulation on the MXU.
    h = jnp.dot(z, w1_ref[...], preferred_element_type=jnp.float32)
    h = h + b1_ref[...]                 # (1, D) bias broadcasts over batch rows
    h = jnp.maximum(h, 0.0)             # ReLU in f32 (v5e has no bf16 VPU path)
    # Second matmul: feed hidden in the weight dtype (bf16 when enabled).
    out = jnp.dot(h.astype(w2_ref.dtype), w2_ref[...],
                  preferred_element_type=jnp.float32)
    out = out + b2_ref[...]
    o_ref[...] = out.astype(o_ref.dtype)


def _round_up(x, m):
    return pl.cdiv(x, m) * m


@functools.partial(jax.jit, static_argnames=("block_m", "compute_dtype"))
def projection_head(z, w1, b1, w2, b2, *, block_m=128,
                    compute_dtype=jnp.bfloat16):
    """z: (B, D); w1, w2: (D, D) pre-transposed (in, out); b1, b2: (D,)."""
    B, D = z.shape
    out_dtype = z.dtype

    # Lane axis (features) padded to a multiple of 128; batch tile is a
    # multiple of 8 sublanes and divides the padded batch.
    D_pad = _round_up(D, 128)
    block_m = min(block_m, _round_up(B, 8))
    B_pad = _round_up(B, block_m)

    if D_pad != D:
        w1 = jnp.pad(w1, ((0, D_pad - D), (0, D_pad - D)))
        w2 = jnp.pad(w2, ((0, D_pad - D), (0, D_pad - D)))
        b1 = jnp.pad(b1, (0, D_pad - D))
        b2 = jnp.pad(b2, (0, D_pad - D))
    if D_pad != D or B_pad != B:
        z = jnp.pad(z, ((0, B_pad - B), (0, D_pad - D)))

    # Matmul operands in compute_dtype (bf16 by default); biases stay f32 so
    # the bias add / ReLU epilogue runs in f32 on the accumulator.
    z_c = z.astype(compute_dtype)
    w1_c = w1.astype(compute_dtype)
    w2_c = w2.astype(compute_dtype)
    b1_2d = b1.reshape(1, D_pad).astype(jnp.float32)
    b2_2d = b2.reshape(1, D_pad).astype(jnp.float32)

    grid_m = B_pad // block_m

    out = pl.pallas_call(
        projection_head_kernel,
        out_shape=jax.ShapeDtypeStruct((B_pad, D_pad), out_dtype),
        grid_spec=pltpu.PrefetchScalarGridSpec(
            num_scalar_prefetch=0,
            grid=(grid_m,),
            in_specs=[
                pl.BlockSpec((block_m, D_pad), lambda i: (i, 0)),  # z tile (pipelined)
                pl.BlockSpec((D_pad, D_pad), lambda i: (0, 0)),    # W1 (VMEM-resident)
                pl.BlockSpec((1, D_pad), lambda i: (0, 0)),        # b1
                pl.BlockSpec((D_pad, D_pad), lambda i: (0, 0)),    # W2 (VMEM-resident)
                pl.BlockSpec((1, D_pad), lambda i: (0, 0)),        # b2
            ],
            out_specs=pl.BlockSpec((block_m, D_pad), lambda i: (i, 0)),
        ),
        compiler_params=pltpu.CompilerParams(
            # Batch tiles are independent -> shard across TCs on v7x.
            dimension_semantics=("parallel",)),
        # TODO(synk): for very large n_latents (weights > VMEM budget), add a
        # K-tiled "arbitrary" grid axis with an f32 accumulator scratch.
    )(z_c, w1_c, b1_2d, w2_c, b2_2d)

    if D_pad != D or B_pad != B:
        out = out[:B, :D]
    return out


def init_params(key, n_latents, dtype=jnp.float32):
    """Deterministic init mimicking nn.Linear default (uniform(-1/sqrt(in), 1/sqrt(in)))."""
    k1, k2, k3, k4 = jax.random.split(key, 4)
    bound = 1.0 / jnp.sqrt(n_latents)
    # PyTorch Linear weight is (out, in); we store the transpose (in, out).
    w1 = jax.random.uniform(k1, (n_latents, n_latents), dtype, -bound, bound)
    b1 = jax.random.uniform(k2, (n_latents,), dtype, -bound, bound)
    w2 = jax.random.uniform(k3, (n_latents, n_latents), dtype, -bound, bound)
    b2 = jax.random.uniform(k4, (n_latents,), dtype, -bound, bound)
    return w1, b1, w2, b2


def _reference(z, w1, b1, w2, b2):
    return jnp.maximum(z @ w1 + b1, 0.0) @ w2 + b2


if __name__ == "__main__":
    key = jax.random.PRNGKey(0)

    # Case 1: aligned shapes (no padding path), bf16 matmuls, grid of 2 tiles.
    batch, n_latents = 256, 128
    kz, kp = jax.random.split(key)
    z = jax.random.normal(kz, (batch, n_latents), jnp.float32)
    w1, b1, w2, b2 = init_params(kp, n_latents)

    out = projection_head(z, w1, b1, w2, b2, compute_dtype=jnp.bfloat16)
    out = jax.block_until_ready(out)
    ref = _reference(z, w1, b1, w2, b2)
    assert out.shape == (batch, n_latents)
    assert jnp.allclose(out, ref, atol=3e-2, rtol=3e-2), "bf16 path mismatch"

    # Case 2: unaligned shapes exercise the pad/slice path, f32 matmuls.
    batch2, n_latents2 = 200, 96
    kz2, kp2 = jax.random.split(jax.random.PRNGKey(1))
    z2 = jax.random.normal(kz2, (batch2, n_latents2), jnp.float32)
    w1b, b1b, w2b, b2b = init_params(kp2, n_latents2)

    out2 = projection_head(z2, w1b, b1b, w2b, b2b, compute_dtype=jnp.float32)
    out2 = jax.block_until_ready(out2)
    ref2 = _reference(z2, w1b, b1b, w2b, b2b)
    assert out2.shape == (batch2, n_latents2)
    assert jnp.allclose(out2, ref2, atol=1e-2, rtol=1e-2), "f32 padded path mismatch"

    print("KERNEL_OK")
</pallas_src>

<mosaic_0001>
module attributes {stable_mosaic.version = 11 : i64} {
  func.func @projection_head_kernel(%arg0: i32, %arg1: memref<128x128xbf16, #tpu.memory_space<vmem>>, %arg2: memref<128x128xbf16, #tpu.memory_space<vmem>>, %arg3: memref<1x128xf32, #tpu.memory_space<vmem>>, %arg4: memref<128x128xbf16, #tpu.memory_space<vmem>>, %arg5: memref<1x128xf32, #tpu.memory_space<vmem>>, %arg6: memref<128x128xf32, #tpu.memory_space<vmem>>) attributes {dimension_semantics = [#tpu.dimension_semantics<parallel>], iteration_bounds = array<i64: 2>, scalar_prefetch = 0 : i64, scratch_operands = 0 : i64, tpu.core_type = #tpu.core_type<tc>, window_params = [{transform_indices = @transform_0, window_bounds = array<i64: 128, 128>}, {pipeline_mode = #tpu.pipeline_mode<synchronous>, transform_indices = @transform_1, window_bounds = array<i64: 128, 128>}, {pipeline_mode = #tpu.pipeline_mode<synchronous>, transform_indices = @transform_2, window_bounds = array<i64: 1, 128>}, {pipeline_mode = #tpu.pipeline_mode<synchronous>, transform_indices = @transform_3, window_bounds = array<i64: 128, 128>}, {pipeline_mode = #tpu.pipeline_mode<synchronous>, transform_indices = @transform_4, window_bounds = array<i64: 1, 128>}, {transform_indices = @transform_5, window_bounds = array<i64: 128, 128>}]} {
    %c0 = arith.constant 0 : index
    %c0_0 = arith.constant 0 : index
    %0 = vector.load %arg1[%c0, %c0_0] : memref<128x128xbf16, #tpu.memory_space<vmem>>, vector<128x128xbf16>
    %c0_1 = arith.constant 0 : index
    %c0_2 = arith.constant 0 : index
    %1 = vector.load %arg2[%c0_1, %c0_2] : memref<128x128xbf16, #tpu.memory_space<vmem>>, vector<128x128xbf16>
    %cst = arith.constant dense<0.000000e+00> : vector<128x128xf32>
    %2 = tpu.matmul %0, %1, %cst {dimension_numbers = #tpu.dot_dimension_numbers<[1], [0], [0], [1], [0, 0, 1, 1], [], []>} : vector<128x128xbf16>, vector<128x128xbf16>, vector<128x128xf32> -> vector<128x128xf32>
    %c0_3 = arith.constant 0 : index
    %c0_4 = arith.constant 0 : index
    %3 = vector.load %arg3[%c0_3, %c0_4] : memref<1x128xf32, #tpu.memory_space<vmem>>, vector<1x128xf32>
    %4 = vector.broadcast %3 : vector<1x128xf32> to vector<128x128xf32>
    %5 = arith.addf %2, %4 : vector<128x128xf32>
    %cst_5 = arith.constant 0.000000e+00 : f32
    %6 = vector.broadcast %cst_5 : f32 to vector<128x128xf32>
    %7 = arith.maximumf %5, %6 : vector<128x128xf32>
    %8 = arith.truncf %7 : vector<128x128xf32> to vector<128x128xbf16>
    %c0_6 = arith.constant 0 : index
    %c0_7 = arith.constant 0 : index
    %9 = vector.load %arg4[%c0_6, %c0_7] : memref<128x128xbf16, #tpu.memory_space<vmem>>, vector<128x128xbf16>
    %cst_8 = arith.constant dense<0.000000e+00> : vector<128x128xf32>
    %10 = tpu.matmul %8, %9, %cst_8 {dimension_numbers = #tpu.dot_dimension_numbers<[1], [0], [0], [1], [0, 0, 1, 1], [], []>} : vector<128x128xbf16>, vector<128x128xbf16>, vector<128x128xf32> -> vector<128x128xf32>
    %c0_9 = arith.constant 0 : index
    %c0_10 = arith.constant 0 : index
    %11 = vector.load %arg5[%c0_9, %c0_10] : memref<1x128xf32, #tpu.memory_space<vmem>>, vector<1x128xf32>
    %12 = vector.broadcast %11 : vector<1x128xf32> to vector<128x128xf32>
    %13 = arith.addf %10, %12 : vector<128x128xf32>
    %c0_11 = arith.constant 0 : index
    %c0_12 = arith.constant 0 : index
    %14 = vector.load %arg6[%c0_11, %c0_12] : memref<128x128xf32, #tpu.memory_space<vmem>>, vector<128x128xf32>
    tpu.vector_store %arg6[%c0_11, %c0_12], %13 {strides = array<i32>} : memref<128x128xf32, #tpu.memory_space<vmem>>, vector<128x128xf32>,
    return
  }
  func.func @transform_0(%arg0: i32) -> (i32, i32) {
    %c0_i32 = arith.constant 0 : i32
    %c0_i32_0 = arith.constant 0 : i32
    return %arg0, %c0_i32 : i32, i32
  }
  func.func @transform_1(%arg0: i32) -> (i32, i32) {
    %c0_i32 = arith.constant 0 : i32
    %c0_i32_0 = arith.constant 0 : i32
    %c0_i32_1 = arith.constant 0 : i32
    return %c0_i32, %c0_i32_0 : i32, i32
  }
  func.func @transform_2(%arg0: i32) -> (i32, i32) {
    %c0_i32 = arith.constant 0 : i32
    %c0_i32_0 = arith.constant 0 : i32
    %c0_i32_1 = arith.constant 0 : i32
    return %c0_i32, %c0_i32_0 : i32, i32
  }
  func.func @transform_3(%arg0: i32) -> (i32, i32) {
    %c0_i32 = arith.constant 0 : i32
    %c0_i32_0 = arith.constant 0 : i32
    %c0_i32_1 = arith.constant 0 : i32
    return %c0_i32, %c0_i32_0 : i32, i32
  }
  func.func @transform_4(%arg0: i32) -> (i32, i32) {
    %c0_i32 = arith.constant 0 : i32
    %c0_i32_0 = arith.constant 0 : i32
    %c0_i32_1 = arith.constant 0 : i32
    return %c0_i32, %c0_i32_0 : i32, i32
  }
  func.func @transform_5(%arg0: i32) -> (i32, i32) {
    %c0_i32 = arith.constant 0 : i32
    %c0_i32_0 = arith.constant 0 : i32
    return %arg0, %c0_i32 : i32, i32
  }
}

</mosaic_0001>

<bundles_post_ra>
// kernel: projection_head.1
= control target key start
LH: loop header
LB: loop body
LE: loop exit
PB: predicated region body
PF: predicated region fallthrough
CT: control target
= control target key end

     0   :  { %10 = vsyncpa [#allocation3], 0  ;;  %s1091_s0 = inlined_call_operand.vmem [shape: bf16[256,128], index: 0, kind: input, shape index: {}]   ;;  %s1092_s1 = inlined_call_operand.vmem [shape: bf16[128,128], index: 1, kind: input, shape index: {}]   ;;  %s1093_s2 = inlined_call_operand.vmem [shape: f32[1,128], index: 2, kind: input, shape index: {}]   ;;  %s1094_s3 = inlined_call_operand.vmem [shape: bf16[128,128], index: 3, kind: input, shape index: {}]   ;;  %s1095_s4 = inlined_call_operand.vmem [shape: f32[1,128], index: 4, kind: input, shape index: {}]   ;;  %s1096_s5 = inlined_call_operand.hbm [shape: f32[256,128], index: 5, kind: output, shape index: {}]  }
   0x1   :  { %12 = vsyncpa [#allocation3 + $0x1], 0  ;;  %s930_s18 = smov 0   ;;  %s932_s19 = smov 0  }
   0x2   :  { %s934_s20 = smov 0   ;;  %s936_s21 = smov 0  }
   0x3 LB: > { %s951_s22 = sadd.s32 4294967295, %s896_s21   ;;  %s642_s23 = sadd.s32 4294967294, %s896_s21   ;;  %s896_s21 = sphi %s936_s21, %s1102_s21   ;;  %s892_s20 = sphi %s934_s20, %s1101_s20   ;;  %s888_s19 = sphi %s932_s19, %s1100_s19   ;;  %s884_s18 = sphi %s930_s18, %s1099_s18  }
   0x4   : > { %s955_s24 = sadd.s32 1, %s896_s21   ;;  %s135_s25 = sadd.s32 1, %s892_s20 }
   0x5   : > { %s132_s26 = ssub.s32 %s896_s21, %s955_s24  ;;  %p145_p0 = scmp.ne.s32.totalorder %s892_s20, %s888_s19 }
   0x6   : > { %p133_p1 = scmp.eq.s32.totalorder %s132_s26, 0  ;;  %p146_p2 = scmp.eq.s32.totalorder %s951_s22, 1 }
   0x7   : > { %p151_p3 = scmp.ne.s32.totalorder %s888_s19, %s884_s18  ;;  %p152_p4 = scmp.eq.s32.totalorder %s642_s23, 1 }
   0x8   : > { %s966_s27 = scalar_select %p133_p1, %s892_s20, %s135_s25  }
   0x9   : > { %p968_p5 = por %p146_p2, %p145_p0  ;;  %p972_p6 = por %p152_p4, %p151_p3 }
   0xa   : > { %p645_p7 = scmp.ge.s32.totalorder %s896_s21, 1  ;;  %p191_p8 = scmp.lt.s32.totalorder %s896_s21, 3 }
   0xc   : > { %p192_p9 = pnand %p645_p7, %p191_p8 }
   0xd   : > { %s647_s13 = sshll.u32 (!%p192_p9), %s951_s22, 4  ;;  %s216_s12 = sand.u32 (!%p192_p9), 1, %s888_s19  }
   0xe   : > { %195 = sbr.rel (%p192_p9) target bundleno = 391 (0x187), region = 40  ;;  %p220_p10 = scmp.lt.s32.totalorder (!%p192_p9), %s647_s13, 31 }
   0xf   : > { %s774_s17 = sshll.u32 (!%p192_p9), %s951_s22, 7  ;;  %s565_s7 = scalar_lea.sflag (!%p192_p9), [#allocation3], %s216_s12 }
  0x10   : > { %s854_s11 = scalar_lea.hbm (!%p192_p9), %s1096_s5, 256 }
  0x13   : > { %v765_v0 = vld [vmem:[%s1092_s1 + $0x38] sm:$0xff]  ;;  %v764_v1 = vld [vmem:[%s1092_s1 + $0x30] sm:$0xff]  ;;  %v763_v2 = vld [vmem:[%s1092_s1 + $0x28] sm:$0xff]  ;;  %s1104_s13 = smov (!%p220_p10, %s647_s13), 31 }
  0x14   : > { %358 = vmatpush.bf16.msra.mxu0 %v765_v0  ;;  %775 = vmatpush.bf16.msra.mxu2 %v765_v0  ;;  %v762_v3 = vld [vmem:[%s1092_s1 + $0x20] sm:$0xff]  ;;  %v761_v4 = vld [vmem:[%s1092_s1 + $0x18] sm:$0xff]  ;;  %v760_v5 = vld [vmem:[%s1092_s1 + $0x10] sm:$0xff]  ;;  %s648_s26 = sshll.u32 %s1104_s13, 2  ;;  %s646_s13 = sshll.u32 %s216_s12, 7 }
  0x15   : > { %v759_v6 = vld [vmem:[%s1092_s1 + $0x8] sm:$0xff]  ;;  %v758_v7 = vld [vmem:[%s1092_s1] sm:$0xff]  ;;  %s223_s9 = scalar_lea.vmem %s1091_s0, %s648_s26  ;;  %v773_v12 = vld [vmem:[%s1094_s3 + $0x38] sm:$0xff]  ;;  %s1039_s16 = scalar_lea.vmem [#allocation2], %s646_s13 }
  0x16   : > { %v750_v8 = vld [vmem:[%s223_s9] sm:$0xff]  ;;  %v751_v10 = vld [vmem:[%s223_s9 + $0x8] sm:$0xff]  ;;  %499 = vmatpush.bf16.msra.mxu1 %v773_v12  ;;  %v772_v13 = vld [vmem:[%s1094_s3 + $0x30] sm:$0xff]  ;;  %783 = vmatpush.bf16.msra.mxu3 %v773_v12  ;;  %s576_s26 = scalar_lea.hbm %s1096_s5, %s774_s17  ;;  %s577_s30 = sshll.u32 %s1039_s16, 4  ;;  %s578_s30 = int_to_ptr.vmem [resolvable:$true] %s577_s30 }
  0x17   : > { %v754_v9 = vld [vmem:[%s223_s9 + $0x20] sm:$0xff]  ;;  %v755_v11 = vld [vmem:[%s223_s9 + $0x28] sm:$0xff]  ;;  %v752_v16 = vld [vmem:[%s223_s9 + $0x10] sm:$0xff]  ;;  %s579_s6 = sshll.u32 %s576_s26, 4  ;;  %s580_s6 = int_to_ptr.hbm [resolvable:$true] %s579_s6 }
  0x18   : > { %359 = vmatpush.bf16.msra.mxu0 %v764_v1  ;;  %776 = vmatpush.bf16.msra.mxu2 %v764_v1  ;;  %v771_v14 = vld [vmem:[%s1094_s3 + $0x28] sm:$0xff]  ;;  %v770_v15 = vld [vmem:[%s1094_s3 + $0x20] sm:$0xff]  ;;  %v756_v17 = vld [vmem:[%s223_s9 + $0x30] sm:$0xff]  ;;  %s848_s8 = sshra.s32 %s580_s6, 4  ;;  %s849_s8 = int_to_ptr.hbm [resolvable:$true] %s848_s8 }
  0x19   : > { %v753_v18 = vld [vmem:[%s223_s9 + $0x18] sm:$0xff]  ;;  %v768_v21 = vld [vmem:[%s1094_s3 + $0x10] sm:$0xff]  ;;  %v767_v22 = vld [vmem:[%s1094_s3 + $0x8] sm:$0xff]  ;;  %s850_s22 = scalar_lea.hbm %s849_s8, 128  ;;  %p855_p0 = scmp.lt.s32.totalorder %s849_s8, %s1096_s5 }
  0x1a   : > { %500 = vmatpush.bf16.msra.mxu1 %v772_v13  ;;  %784 = vmatpush.bf16.msra.mxu3 %v772_v13  ;;  %v757_v19 = vld [vmem:[%s223_s9 + $0x38] sm:$0xff]  ;;  %v766_v23 = vld [vmem:[%s1094_s3] sm:$0xff]  ;;  %p851_p11 = scmp.ne.s32.totalorder %s849_s8, %s850_s22  ;;  %p856_p1 = scmp.lt.s32.totalorder %s854_s11, %s850_s22 }
  0x1b   : > { %v769_v20 = vld [vmem:[%s1094_s3 + $0x18] sm:$0xff]  ;;  %v832_v25 = vld [vmem:[%s1093_s2] ss:$0 sm:$0xff] }
  0x1c   : > { %360 = vmatpush.bf16.msra.mxu0 %v763_v2  ;;  %777 = vmatpush.bf16.msra.mxu2 %v763_v2  ;;  %p852_p12 = pnand %p851_p11, %p968_p5  ;;  %p857_p2 = por %p856_p1, %p855_p0 }
  0x1e   : > { %501 = vmatpush.bf16.msra.mxu1 %v771_v14  ;;  %785 = vmatpush.bf16.msra.mxu3 %v771_v14  ;;  %p853_p13 = pneg %p852_p12 }
  0x20   : > { %361 = vmatpush.bf16.msra.mxu0 %v762_v3  ;;  %778 = vmatpush.bf16.msra.mxu2 %v762_v3  ;;  %p858_p3 = pnand %p857_p2, %p853_p13 }
  0x22   : > { %502 = vmatpush.bf16.msra.mxu1 %v770_v15  ;;  %786 = vmatpush.bf16.msra.mxu3 %v770_v15 }
  0x24   : > { %362 = vmatpush.bf16.msra.mxu0 %v761_v4  ;;  %779 = vmatpush.bf16.msra.mxu2 %v761_v4 }
  0x26   : > { %503 = vmatpush.bf16.msra.mxu1 %v769_v20  ;;  %787 = vmatpush.bf16.msra.mxu3 %v769_v20 }
  0x28   : > { %363 = vmatpush.bf16.msra.mxu0 %v760_v5  ;;  %780 = vmatpush.bf16.msra.mxu2 %v760_v5 }
  0x2a   : > { %504 = vmatpush.bf16.msra.mxu1 %v768_v21  ;;  %788 = vmatpush.bf16.msra.mxu3 %v768_v21 }
  0x2c   : > { %364 = vmatpush.bf16.msra.mxu0 %v759_v6  ;;  %781 = vmatpush.bf16.msra.mxu2 %v759_v6 }
  0x2e   : > { %505 = vmatpush.bf16.msra.mxu1 %v767_v22  ;;  %789 = vmatpush.bf16.msra.mxu3 %v767_v22 }
  0x30   : > { %365 = vmatpush.bf16.msra.mxu0 %v758_v7  ;;  %782 = vmatpush.bf16.msra.mxu2 %v758_v7 }
  0x32   : > { %506 = vmatpush.bf16.msra.mxu1 %v766_v23  ;;  %790 = vmatpush.bf16.msra.mxu3 %v766_v23 }
  0x33   : > { %366 = vmatmul.bf16.vlgmr.msra.gmra.mxu0 %v750_v8  ;;  %386 = vmatmul.bf16.vlgmr.msra.gmra.mxu2 %v754_v9 }
  0x43   : > { %371 = vmatmul.bf16.gmra.mxu0 %v751_v10  ;;  %391 = vmatmul.bf16.gmra.mxu2 %v755_v11 }
  0x53   : > { %376 = vmatmul.bf16.gmra.mxu0 %v752_v16  ;;  %396 = vmatmul.bf16.gmra.mxu2 %v756_v17  ;;  %v833_v17 = vld [vmem:[%s1095_s4] ss:$0 sm:$0xff] }
  0x63   : > { %381 = vmatmul.bf16.gmra.mxu0 %v753_v18  ;;  %401 = vmatmul.bf16.gmra.mxu2 %v757_v19 }
  0xb0   : > { %v367_v24 = vpop.f32.mrf.mxu0 }
  0xb1   : > { %v368_v26 = vadd.f32 %v832_v25, %v367_v24 }
  0xb3   : > { %v407_v29 = vmax.f32 %v368_v26, 0.0 }
  0xb6   : > { %v387_v27 = vpop.f32.mrf.mxu2 }
  0xb7   : > { %v388_v32 = vadd.f32 %v832_v25, %v387_v27 }
  0xb8   : > { %v369_v28 = vpop.f32.mrf.mxu0 }
  0xb9   : > { %v370_v30 = vadd.f32 %v832_v25, %v369_v28  ;;  %v415_v37 = vmax.f32 %v388_v32, 0.0 }
  0xbb   : > { %v408_v31 = vmax.f32 %v370_v30, 0.0 }
  0xbd   : > { %v423_v33 = vpack.c.bf16 %v408_v31, %v407_v29 }
  0xbe   : > { %v389_v34 = vpop.f32.mrf.mxu2 }
  0xbf   : > { %v390_v35 = vadd.f32 %v832_v25, %v389_v34  ;;  %507 = vmatmul.bf16.vlgmr.msra.gmra.mxu1 %v423_v33 }
  0xc0   : > { %v372_v36 = vpop.f32.mrf.mxu0 }
  0xc1   : > { %v416_v38 = vmax.f32 %v390_v35, 0.0  ;;  %v373_v40 = vadd.f32 %v832_v25, %v372_v36 }
  0xc3   : > { %v427_v39 = vpack.c.bf16 %v416_v38, %v415_v37  ;;  %v409_v43 = vmax.f32 %v373_v40, 0.0 }
  0xc5   : > { %527 = vmatmul.bf16.vlgmr.msra.gmra.mxu3 %v427_v39 }
  0xc6   : > { %v392_v41 = vpop.f32.mrf.mxu2 }
  0xc7   : > { %v393_v46 = vadd.f32 %v832_v25, %v392_v41 }
  0xc8   : > { %v374_v42 = vpop.f32.mrf.mxu0 }
  0xc9   : > { %v375_v44 = vadd.f32 %v832_v25, %v374_v42  ;;  %v417_v51 = vmax.f32 %v393_v46, 0.0 }
  0xcb   : > { %v410_v45 = vmax.f32 %v375_v44, 0.0 }
  0xcd   : > { %v424_v47 = vpack.c.bf16 %v410_v45, %v409_v43 }
  0xce   : > { %v394_v48 = vpop.f32.mrf.mxu2 }
  0xcf   : > { %v395_v49 = vadd.f32 %v832_v25, %v394_v48  ;;  %512 = vmatmul.bf16.gmra.mxu1 %v424_v47 }
  0xd0   : > { %v377_v50 = vpop.f32.mrf.mxu0 }
  0xd1   : > { %v418_v52 = vmax.f32 %v395_v49, 0.0  ;;  %v378_v54 = vadd.f32 %v832_v25, %v377_v50 }
  0xd3   : > { %v428_v53 = vpack.c.bf16 %v418_v52, %v417_v51  ;;  %v411_v57 = vmax.f32 %v378_v54, 0.0 }
  0xd5   : > { %532 = vmatmul.bf16.gmra.mxu3 %v428_v53 }
  0xd6   : > { %v397_v55 = vpop.f32.mrf.mxu2 }
  0xd7   : > { %v398_v60 = vadd.f32 %v832_v25, %v397_v55 }
  0xd8   : > { %v379_v56 = vpop.f32.mrf.mxu0 }
  0xd9   : > { %v380_v58 = vadd.f32 %v832_v25, %v379_v56  ;;  %v419_v1 = vmax.f32 %v398_v60, 0.0 }
  0xdb   : > { %v412_v59 = vmax.f32 %v380_v58, 0.0 }
  0xdd   : > { %v425_v61 = vpack.c.bf16 %v412_v59, %v411_v57 }
  0xde   : > { %v399_v62 = vpop.f32.mrf.mxu2 }
  0xdf   : > { %v400_v63 = vadd.f32 %v832_v25, %v399_v62  ;;  %517 = vmatmul.bf16.gmra.mxu1 %v425_v61 }
  0xe0   : > { %v382_v0 = vpop.f32.mrf.mxu0 }
  0xe1   : > { %v420_v2 = vmax.f32 %v400_v63, 0.0  ;;  %v383_v4 = vadd.f32 %v832_v25, %v382_v0 }
  0xe3   : > { %v429_v3 = vpack.c.bf16 %v420_v2, %v419_v1  ;;  %v413_v7 = vmax.f32 %v383_v4, 0.0 }
  0xe5   : > { %537 = vmatmul.bf16.gmra.mxu3 %v429_v3 }
  0xe6   : > { %v402_v5 = vpop.f32.mrf.mxu2 }
  0xe7   : > { %v403_v10 = vadd.f32 %v832_v25, %v402_v5 }
  0xe8   : > { %v384_v6 = vpop.f32.mrf.mxu0 }
  0xe9   : > { %v385_v8 = vadd.f32 %v832_v25, %v384_v6  ;;  %v421_v14 = vmax.f32 %v403_v10, 0.0 }
  0xeb   : > { %v414_v9 = vmax.f32 %v385_v8, 0.0 }
  0xed   : > { %v426_v11 = vpack.c.bf16 %v414_v9, %v413_v7 }
  0xee   : > { %v404_v12 = vpop.f32.mrf.mxu2 }
  0xef   : > { %v405_v13 = vadd.f32 %v832_v25, %v404_v12  ;;  %522 = vmatmul.bf16.gmra.mxu1 %v426_v11 }
  0xf1   : > { %v422_v15 = vmax.f32 %v405_v13, 0.0 }
  0xf3   : > { %v430_v16 = vpack.c.bf16 %v422_v15, %v421_v14 }
  0xf5   : > { %542 = vmatmul.bf16.gmra.mxu3 %v430_v16 }
 0x13c   : > { %v508_v18 = vpop.f32.mrf.mxu1 }
 0x13d   : > { %v509_v19 = vadd.f32 %v833_v17, %v508_v18 }
 0x13f   : > { %548 = vst [vmem:[%s1039_s16] sm:$0xff] %v509_v19 }
 0x144   : > { %v510_v20 = vpop.f32.mrf.mxu1 }
 0x145   : > { %v511_v21 = vadd.f32 %v833_v17, %v510_v20 }
 0x147   : > { %549 = vst [vmem:[%s1039_s16 + $0x8] sm:$0xff] %v511_v21 }
 0x148   : > { %v528_v22 = vpop.f32.mrf.mxu3 }
 0x149   : > { %v529_v23 = vadd.f32 %v833_v17, %v528_v22 }
 0x14b   : > { %556 = vst [vmem:[%s1039_s16 + $0x40] sm:$0xff] %v529_v23 }
 0x14c   : > { %v513_v24 = vpop.f32.mrf.mxu1 }
 0x14d   : > { %v514_v25 = vadd.f32 %v833_v17, %v513_v24 }
 0x14f   : > { %550 = vst [vmem:[%s1039_s16 + $0x10] sm:$0xff] %v514_v25 }
 0x150   : > { %v530_v26 = vpop.f32.mrf.mxu3 }
 0x151   : > { %v531_v27 = vadd.f32 %v833_v17, %v530_v26 }
 0x153   : > { %557 = vst [vmem:[%s1039_s16 + $0x48] sm:$0xff] %v531_v27 }
 0x154   : > { %v515_v28 = vpop.f32.mrf.mxu1 }
 0x155   : > { %v516_v29 = vadd.f32 %v833_v17, %v515_v28 }
 0x157   : > { %551 = vst [vmem:[%s1039_s16 + $0x18] sm:$0xff] %v516_v29 }
 0x158   : > { %v533_v30 = vpop.f32.mrf.mxu3 }
 0x159   : > { %v534_v31 = vadd.f32 %v833_v17, %v533_v30 }
 0x15b   : > { %558 = vst [vmem:[%s1039_s16 + $0x50] sm:$0xff] %v534_v31 }
 0x15c   : > { %v518_v32 = vpop.f32.mrf.mxu1 }
 0x15d   : > { %v519_v33 = vadd.f32 %v833_v17, %v518_v32 }
 0x15f   : > { %552 = vst [vmem:[%s1039_s16 + $0x20] sm:$0xff] %v519_v33 }
 0x160   : > { %v535_v34 = vpop.f32.mrf.mxu3 }
 0x161   : > { %v536_v35 = vadd.f32 %v833_v17, %v535_v34 }
 0x163   : > { %559 = vst [vmem:[%s1039_s16 + $0x58] sm:$0xff] %v536_v35 }
 0x164   : > { %v520_v36 = vpop.f32.mrf.mxu1 }
 0x165   : > { %v521_v37 = vadd.f32 %v833_v17, %v520_v36 }
 0x167   : > { %553 = vst [vmem:[%s1039_s16 + $0x28] sm:$0xff] %v521_v37 }
 0x168   : > { %v538_v38 = vpop.f32.mrf.mxu3 }
 0x169   : > { %v539_v39 = vadd.f32 %v833_v17, %v538_v38 }
 0x16b   : > { %560 = vst [vmem:[%s1039_s16 + $0x60] sm:$0xff] %v539_v39 }
 0x16c   : > { %v523_v40 = vpop.f32.mrf.mxu1 }
 0x16d   : > { %v524_v41 = vadd.f32 %v833_v17, %v523_v40 }
 0x16f   : > { %554 = vst [vmem:[%s1039_s16 + $0x30] sm:$0xff] %v524_v41 }
 0x170   : > { %v540_v42 = vpop.f32.mrf.mxu3 }
 0x171   : > { %v541_v43 = vadd.f32 %v833_v17, %v540_v42 }
 0x173   : > { %561 = vst [vmem:[%s1039_s16 + $0x68] sm:$0xff] %v541_v43 }
 0x174   : > { %v525_v44 = vpop.f32.mrf.mxu1 }
 0x175   : > { %v526_v45 = vadd.f32 %v833_v17, %v525_v44 }
 0x177   : > { %555 = vst [vmem:[%s1039_s16 + $0x38] sm:$0xff] %v526_v45 }
 0x178   : > { %v543_v46 = vpop.f32.mrf.mxu3 }
 0x179   : > { %v544_v47 = vadd.f32 %v833_v17, %v543_v46 }
 0x17b   : > { %562 = vst [vmem:[%s1039_s16 + $0x70] sm:$0xff] %v544_v47 }
 0x180   : > { %v545_v48 = vpop.f32.mrf.mxu3 }
 0x181   : > { %v546_v49 = vadd.f32 %v833_v17, %v545_v48 }
 0x183   : > { %563 = vst [vmem:[%s1039_s16 + $0x78] sm:$0xff] %v546_v49 }
 0x184   : > { %861 = shalt.err (!%p858_p3)
}
 0x185   : > { %s898_s12 = smov 128   ;;  %s899_s15 = smov 8  }
 0x186   : > { %791 = dma.vmem_to_hbm [thread:$0]  (%p968_p5), %s578_s30, 2048, %s580_s6, %s565_s7, %s898_s12, %s898_s12, %s899_s15  }
 0x187 PF: > { %p797_p4 = scmp.ge.s32.totalorder %s896_s21, 2  ;;  %s594_s16 = sand.u32 1, %s884_s18  }
 0x188   : > { %s595_s17 = scalar_lea.sflag [#allocation3], %s594_s16 }
 0x189   : > { %p794_p7 = pnand %p797_p4, %p972_p6 }
 0x18b   : > { %p795_p8 = pneg %p794_p7 }
 0x18d   : > { %879 = dma.done.wait (%p795_p8), %s595_s17, 2048  }
 0x18e   : > { %881 = vsyncadd (%p795_p8), %s595_s17, 4294965248  ;;  %p15_p9 = scmp.ge.s32.totalorder %s955_s24, 4   ;;  %s1099_s18 = smov %s888_s19 }
 0x18f   : > { %s1100_s19 = smov %s892_s20  ;;  %s1101_s20 = smov %s966_s27 }
 0x190   : > { %s1102_s21 = smov %s955_s24  ;;  %17 = sbr.rel (!%p15_p9) target bundleno = 3 (0x3), region = 75 }
 0x195   :  { %601 = vsyncpa [#allocation3], 1 }
 0x196   :  { %603 = vsyncpa [#allocation3 + $0x1], 1 }

</bundles_post_ra>
